<compile_context>
chip_gen: v5e
topology: v5e:2x2
jax: 0.10.0
libtpu: 0.0.40
codegen_flags: <defaults>
</compile_context>

<pallas_src>
import jax
import jax.numpy as jnp
from jax.experimental import pallas as pl
from jax.experimental.pallas import tpu as pltpu

IN1, OUT1 = 2, 3              # linear1: 2 -> 3
IN2, OUT2 = 3, 2              # linear2: 3 -> 2
F_OUT = IN1 + OUT1 + OUT2     # 7 concatenated output features
COEFF_ROWS = 8                # 3 real rows (x0-coeff, x1-coeff, const) + 5 pad
MAX_TILE_N = 512              # rows per grid step (512x7 f32 << VMEM everywhere)
MIN_GRID_STEPS = 4            # keep >=4 parallel steps for v7x's 2 TensorCores
SMALL_N_BYPASS = 64           # below this, plain XLA beats a kernel launch


def _round_up(x, m):
    return ((x + m - 1) // m) * m


def _mlp_cat_kernel(c_ref, x_ref, out_ref):
    # c_ref:   VMEM (8, 7)       rows 0/1 = x0/x1 coefficients, row 2 = consts
    # x_ref:   VMEM (tile_n, 2)  input rows
    # out_ref: VMEM (tile_n, 7)  cols 0-1 = x, 2-4 = v1, 5-6 = v2
    x0 = x_ref[:, 0:1]                                   # (tile_n, 1)
    x1 = x_ref[:, 1:2]
    out_ref[...] = (x0 * c_ref[0:1, :]                   # two broadcast FMAs
                    + x1 * c_ref[1:2, :]
                    + c_ref[2:3, :])                     # + constant row


def pack_coeffs(w1, b1, w2, b2):
    """Fold [identity | linear1 | linear2∘linear1] into one (8, 7) coeff tile.

    Torch Linear layout: w1 (3,2), b1 (3,), w2 (2,3), b2 (2,). Done once at
    init time -- keeps all matmuls/zeros/transposes out of the per-call path.
    """
    w1 = w1.astype(jnp.float32); b1 = b1.astype(jnp.float32)
    w2 = w2.astype(jnp.float32); b2 = b2.astype(jnp.float32)
    w21 = w2 @ w1                 # (2,2): v2 = x @ (w2@w1).T + (w2@b1 + b2)
    b21 = w2 @ b1 + b2            # (2,)
    A = jnp.zeros((3, F_OUT), jnp.float32)
    A = A.at[0:2, 0:2].set(jnp.eye(2, dtype=jnp.float32))   # x passthrough
    A = A.at[0:2, 2:5].set(w1.T)                             # v1 coefficients
    A = A.at[2,   2:5].set(b1)                               # v1 bias
    A = A.at[0:2, 5:7].set(w21.T)                            # v2 (folded) coeffs
    A = A.at[2,   5:7].set(b21)                              # v2 (folded) bias
    return jnp.zeros((COEFF_ROWS, F_OUT), jnp.float32).at[0:3, :].set(A)


@jax.jit
def _pallas_forward(x1, coeffs):
    """Tiled Pallas path. Used for any batch; model_forward bypasses tiny n."""
    n = x1.shape[0]
    x1 = x1.astype(jnp.float32)

    # Tile sizing: multiple of 8 sublanes, <=512 rows, aim for >=4 grid steps.
    n8 = _round_up(max(n, 1), 8)
    tile_n = min(MAX_TILE_N, max(8, _round_up(pl.cdiv(n8, MIN_GRID_STEPS), 8)))
    n_pad = _round_up(n, tile_n)          # pad rows; never one giant block
    grid_n = n_pad // tile_n

    if n_pad != n:
        x1 = jnp.pad(x1, ((0, n_pad - n), (0, 0)))

    out = pl.pallas_call(
        _mlp_cat_kernel,
        out_shape=jax.ShapeDtypeStruct((n_pad, F_OUT), jnp.float32),
        grid=(grid_n,),
        in_specs=[
            # Coefficient tile: constant block index -> resident in VMEM.
            pl.BlockSpec((COEFF_ROWS, F_OUT), lambda i: (0, 0)),
            # Input rows, unpadded feature dim (full-array last dim).
            pl.BlockSpec((tile_n, IN1), lambda i: (i, 0)),
        ],
        # Narrow lane-dense output: 7 real lanes, no 128-wide pad, no slice op.
        out_specs=pl.BlockSpec((tile_n, F_OUT), lambda i: (i, 0)),
        compiler_params=pltpu.CompilerParams(
            dimension_semantics=("parallel",)),
    )(coeffs, x1)

    return out[:n] if n_pad != n else out


@jax.jit
def _dense_forward(x1, coeffs):
    """Plain-XLA path for tiny batches (fused by XLA; no kernel launch)."""
    x1 = x1.astype(jnp.float32)
    return x1 @ coeffs[0:IN1, :] + coeffs[IN1:IN1 + 1, :]


def model_forward(x1, coeffs, x2=None):
    """Equivalent of Model.forward(x1, x2); x2 is unused (as in the module)."""
    del x2
    if x1.shape[0] < SMALL_N_BYPASS:
        return _dense_forward(x1, coeffs)
    return _pallas_forward(x1, coeffs)


def init_params(key):
    # Deterministic init mimicking torch.nn.Linear (uniform +/- 1/sqrt(fan_in)).
    k1, k2, k3, k4 = jax.random.split(key, 4)
    lim1 = 1.0 / jnp.sqrt(float(IN1))
    lim2 = 1.0 / jnp.sqrt(float(IN2))
    w1 = jax.random.uniform(k1, (OUT1, IN1), jnp.float32, -lim1, lim1)
    b1 = jax.random.uniform(k2, (OUT1,), jnp.float32, -lim1, lim1)
    w2 = jax.random.uniform(k3, (OUT2, IN2), jnp.float32, -lim2, lim2)
    b2 = jax.random.uniform(k4, (OUT2,), jnp.float32, -lim2, lim2)
    return w1, b1, w2, b2


if __name__ == "__main__":
    key = jax.random.PRNGKey(0)
    kx, kx2, kb, kp = jax.random.split(key, 4)
    x1 = jax.random.normal(kx, (2, IN1), jnp.float32)
    x2 = jax.random.normal(kx2, (2, IN1), jnp.float32)   # unused by forward
    w1, b1, w2, b2 = init_params(kp)
    coeffs = pack_coeffs(w1, b1, w2, b2)                  # hoisted out of hot path

    def reference(x):
        v1 = x @ w1.T + b1
        v2 = v1 @ w2.T + b2
        return jnp.concatenate([x, v1, v2], axis=1)

    # 1) Pallas kernel at the module's shape (forced past the small-n bypass).
    out_small = jax.block_until_ready(_pallas_forward(x1, coeffs))
    assert out_small.shape == (2, F_OUT), out_small.shape
    assert jnp.allclose(out_small, reference(x1), atol=1e-5, rtol=1e-5), \
        jnp.max(jnp.abs(out_small - reference(x1)))

    # 2) Dispatching wrapper (exercises the small-n XLA bypass).
    out_disp = jax.block_until_ready(model_forward(x1, coeffs, x2))
    assert jnp.allclose(out_disp, reference(x1), atol=1e-5, rtol=1e-5)

    # 3) Larger non-multiple-of-8 batch through the tiled Pallas path
    #    (exercises row padding + multi-step parallel grid).
    xb = jax.random.normal(kb, (200, IN1), jnp.float32)
    out_big = jax.block_until_ready(_pallas_forward(xb, coeffs))
    assert out_big.shape == (200, F_OUT), out_big.shape
    assert jnp.allclose(out_big, reference(xb), atol=1e-5, rtol=1e-5), \
        jnp.max(jnp.abs(out_big - reference(xb)))

    print("KERNEL_OK")
</pallas_src>

<mosaic_0001>
module attributes {stable_mosaic.version = 11 : i64} {
  func.func @_mlp_cat_kernel(%arg0: i32, %arg1: memref<8x7xf32, #tpu.memory_space<vmem>>, %arg2: memref<8x2xf32, #tpu.memory_space<vmem>>, %arg3: memref<8x7xf32, #tpu.memory_space<vmem>>) attributes {dimension_semantics = [#tpu.dimension_semantics<parallel>], iteration_bounds = array<i64: 1>, scalar_prefetch = 0 : i64, scratch_operands = 0 : i64, tpu.core_type = #tpu.core_type<tc>, window_params = [{pipeline_mode = #tpu.pipeline_mode<synchronous>, transform_indices = @transform_0, window_bounds = array<i64: 8, 7>}, {transform_indices = @transform_1, window_bounds = array<i64: 8, 2>}, {transform_indices = @transform_2, window_bounds = array<i64: 8, 7>}]} {
    %c0 = arith.constant 0 : index
    %c0_0 = arith.constant 0 : index
    %0 = vector.load %arg2[%c0, %c0_0] : memref<8x2xf32, #tpu.memory_space<vmem>>, vector<8x1xf32>
    %c0_1 = arith.constant 0 : index
    %c1 = arith.constant 1 : index
    %1 = vector.load %arg2[%c0_1, %c1] : memref<8x2xf32, #tpu.memory_space<vmem>>, vector<8x1xf32>
    %c0_2 = arith.constant 0 : index
    %c0_3 = arith.constant 0 : index
    %2 = vector.load %arg1[%c0_2, %c0_3] : memref<8x7xf32, #tpu.memory_space<vmem>>, vector<1x7xf32>
    %3 = vector.broadcast %0 : vector<8x1xf32> to vector<8x7xf32>
    %4 = vector.broadcast %2 : vector<1x7xf32> to vector<8x7xf32>
    %5 = arith.mulf %3, %4 : vector<8x7xf32>
    %c1_4 = arith.constant 1 : index
    %c0_5 = arith.constant 0 : index
    %6 = vector.load %arg1[%c1_4, %c0_5] : memref<8x7xf32, #tpu.memory_space<vmem>>, vector<1x7xf32>
    %7 = vector.broadcast %1 : vector<8x1xf32> to vector<8x7xf32>
    %8 = vector.broadcast %6 : vector<1x7xf32> to vector<8x7xf32>
    %9 = arith.mulf %7, %8 : vector<8x7xf32>
    %10 = arith.addf %5, %9 : vector<8x7xf32>
    %c2 = arith.constant 2 : index
    %c0_6 = arith.constant 0 : index
    %11 = vector.load %arg1[%c2, %c0_6] : memref<8x7xf32, #tpu.memory_space<vmem>>, vector<1x7xf32>
    %12 = vector.broadcast %11 : vector<1x7xf32> to vector<8x7xf32>
    %13 = arith.addf %10, %12 : vector<8x7xf32>
    %c0_7 = arith.constant 0 : index
    %c0_8 = arith.constant 0 : index
    %14 = vector.load %arg3[%c0_7, %c0_8] : memref<8x7xf32, #tpu.memory_space<vmem>>, vector<8x7xf32>
    tpu.vector_store %arg3[%c0_7, %c0_8], %13 {strides = array<i32>} : memref<8x7xf32, #tpu.memory_space<vmem>>, vector<8x7xf32>,
    return
  }
  func.func @transform_0(%arg0: i32) -> (i32, i32) {
    %c0_i32 = arith.constant 0 : i32
    %c0_i32_0 = arith.constant 0 : i32
    %c0_i32_1 = arith.constant 0 : i32
    return %c0_i32, %c0_i32_0 : i32, i32
  }
  func.func @transform_1(%arg0: i32) -> (i32, i32) {
    %c0_i32 = arith.constant 0 : i32
    %c0_i32_0 = arith.constant 0 : i32
    return %arg0, %c0_i32 : i32, i32
  }
  func.func @transform_2(%arg0: i32) -> (i32, i32) {
    %c0_i32 = arith.constant 0 : i32
    %c0_i32_0 = arith.constant 0 : i32
    return %arg0, %c0_i32 : i32, i32
  }
}

</mosaic_0001>

<bundles_post_ra>
// kernel: _pallas_forward.1
= control target key start
LH: loop header
LB: loop body
LE: loop exit
PB: predicated region body
PF: predicated region fallthrough
CT: control target
= control target key end

     0   :  { %v44_v0 = vmov 0   ;;  %v45_v2 = vmov 1   ;;  %vm31_vm0 = vcmask 56320   ;;  %s76_s1 = inlined_call_operand.vmem [shape: f32[8,2], index: 1, kind: input, shape index: {}]   ;;  %s77_s0 = inlined_call_operand.vmem [shape: f32[8,7], index: 0, kind: input, shape index: {}]   ;;  %s78_s2 = inlined_call_operand.vmem [shape: f32[8,7], index: 2, kind: output, shape index: {}]  }
   0x1   :  { %39 = vset.pattern.permute.xlu0 %v44_v0  ;;  %v11_v1 = vld [vmem:[%s76_s1] sm:$0xff] }
   0x2   :  { %15 = vperm.xlu0 %39, %v11_v1   ;;  %v41_v4 = vld [vmem:[%s77_s0] ss:$0 sm:$0xff]  ;;  %v42_v5 = vld [vmem:[%s77_s0 + $0x1] ss:$0 sm:$0xff]  ;;  %v43_v9 = vld [vmem:[%s77_s0 + $0x2] ss:$0 sm:$0xff] }
   0xa   :  { %40 = vset.pattern.permute.xlu0 %v45_v2 }
   0xb   :  { %22 = vperm.xlu0 %40, %v11_v1  }
  0x74   :  { %v16_v3 = vpop.permute.xlu0 %15 }
  0x75   :  { %v19_v7 = vmul.f32 %v41_v4, %v16_v3 }
  0x7d   :  { %v23_v6 = vpop.permute.xlu0 %22 }
  0x7e   :  { %v26_v8 = vmul.f32 %v42_v5, %v23_v6 }
  0x80   :  { %v27_v10 = vadd.f32 %v26_v8, %v19_v7 }
  0x82   :  { %v30_v11 = vadd.f32 %v43_v9, %v27_v10 }
  0x84   :  { %32 = vst.msk [vmem:[%s78_s2] sm:$0xff] %vm31_vm0, %v30_v11 }

</bundles_post_ra>
